<compile_context>
chip_gen: v7x
topology: tpu7x:2x2x1
jax: 0.10.0
libtpu: 0.0.40
codegen_flags: <defaults>
</compile_context>

<pallas_src>
import functools

import jax
import jax.numpy as jnp
import numpy as np
from jax.experimental import pallas as pl
from jax.experimental.pallas import tpu as pltpu

PADDING_MODES = ["zeros", "reflect", "replicate", "circular"]

# Keep the per-grid-step double-buffered working set comfortably under the
# smallest default scoped-VMEM limit (16 MiB on v5e).
_VMEM_TILE_BUDGET_BYTES = 8 * 1024 * 1024


# --------------------------------------------------------------------------- #
# Pallas kernels
# --------------------------------------------------------------------------- #
def _pad_kernel(x_ref, o_ref, *, left, right, T, mode):
    """Pads one (1, Cb, T) channel-block along time -> (1, Cb, T+left+right).

    Writes directly into output slices (no full-tile concatenate)."""
    cb = x_ref.shape[1]

    # Interior copy.
    o_ref[:, :, left:left + T] = x_ref[...]

    if left > 0:
        if mode == "zeros":
            o_ref[:, :, :left] = jnp.zeros((1, cb, left), o_ref.dtype)
        elif mode == "replicate":
            o_ref[:, :, :left] = jnp.broadcast_to(x_ref[:, :, 0:1], (1, cb, left))
        elif mode == "circular":
            o_ref[:, :, :left] = x_ref[:, :, T - left:T]
        elif mode == "reflect":
            # out[i] = x[left - i], i in [0, left)  ==  reverse of x[1 : left+1]
            o_ref[:, :, :left] = jax.lax.rev(x_ref[:, :, 1:left + 1], (2,))

    if right > 0:
        if mode == "zeros":
            o_ref[:, :, left + T:] = jnp.zeros((1, cb, right), o_ref.dtype)
        elif mode == "replicate":
            o_ref[:, :, left + T:] = jnp.broadcast_to(
                x_ref[:, :, T - 1:T], (1, cb, right))
        elif mode == "circular":
            o_ref[:, :, left + T:] = x_ref[:, :, 0:right]
        elif mode == "reflect":
            # out[T+left+j] = x[T-2-j], j in [0, right)  ==  reverse of x[T-1-right : T-1]
            o_ref[:, :, left + T:] = jax.lax.rev(
                x_ref[:, :, T - 1 - right:T - 1], (2,))


def _stream_pad_kernel(buf_ref, x_ref, o_ref, newbuf_ref, *, pad_len, T):
    """Streaming-inference concat: out = concat(buffer, x) along time axis.

    Also emits the updated state buffer (last pad_len columns of `out`) as a
    second output so the wrapper needs no post-kernel slice.
    """
    # TODO(synk): for very large T this bulk copy could be done as a direct
    # HBM->HBM DMA at an element offset (memory_space=pl.ANY + make_async_copy)
    # to avoid the lane-misaligned VMEM store entirely.
    o_ref[:, :, :pad_len] = buf_ref[...]
    o_ref[:, :, pad_len:] = x_ref[...]

    if T >= pad_len:
        newbuf_ref[...] = x_ref[:, :, T - pad_len:]
    else:
        newbuf_ref[:, :, :pad_len - T] = buf_ref[:, :, T:]
        newbuf_ref[:, :, pad_len - T:] = x_ref[...]


# --------------------------------------------------------------------------- #
# Tiling helper
# --------------------------------------------------------------------------- #
def _choose_channel_block(C, in_cols, out_cols, itemsize,
                          budget=_VMEM_TILE_BUDGET_BYTES):
    """Pick a channel-block size (full C, or a multiple of 8) that keeps the
    double-buffered (input tile + output tile) working set under `budget`."""
    per_channel = (in_cols + out_cols) * itemsize * 2  # x2 for double-buffering
    max_c = max(1, budget // max(per_channel, 1))
    if C <= max_c:
        return C
    ct = max(8, (max_c // 8) * 8)  # sublane (8) aligned when splitting C
    return min(ct, C)


# --------------------------------------------------------------------------- #
# Wrappers
# --------------------------------------------------------------------------- #
def temporal_pad_1d(x, left, right, mode):
    """x: (N, C, T) -> (N, C, T + left + right), padded per `mode`."""
    N, C, T = x.shape
    if left == 0 and right == 0:
        return x
    if mode == "reflect" and (left > T - 1 or right > T - 1):
        raise ValueError(
            f"reflect padding ({left},{right}) must be < input time dim {T}")
    if mode == "circular" and (left > T or right > T):
        raise ValueError(
            f"circular padding ({left},{right}) must be <= input time dim {T}")

    T_out = T + left + right
    itemsize = jnp.dtype(x.dtype).itemsize
    Ct = _choose_channel_block(C, T, T_out, itemsize)
    grid = (N, pl.cdiv(C, Ct))

    kernel = functools.partial(_pad_kernel, left=left, right=right, T=T, mode=mode)
    return pl.pallas_call(
        kernel,
        out_shape=jax.ShapeDtypeStruct((N, C, T_out), x.dtype),
        grid=grid,
        in_specs=[pl.BlockSpec((1, Ct, T), lambda n, c: (n, c, 0))],
        out_specs=pl.BlockSpec((1, Ct, T_out), lambda n, c: (n, c, 0)),
        compiler_params=pltpu.CompilerParams(
            dimension_semantics=("parallel", "parallel")),
    )(x)


def streaming_pad_1d(buffer, x, pad_len):
    """buffer: (1, C, pad_len), x: (1, C, T)
       -> (out: (1, C, pad_len + T), new_buffer: (1, C, pad_len))."""
    _, C, T = x.shape
    if pad_len == 0:
        return x, buffer

    T_out = T + pad_len
    itemsize = jnp.dtype(x.dtype).itemsize
    Ct = _choose_channel_block(C, T + pad_len, T_out + pad_len, itemsize)
    grid = (pl.cdiv(C, Ct),)

    kernel = functools.partial(_stream_pad_kernel, pad_len=pad_len, T=T)
    out, new_buf = pl.pallas_call(
        kernel,
        out_shape=(jax.ShapeDtypeStruct((1, C, T_out), x.dtype),
                   jax.ShapeDtypeStruct((1, C, pad_len), x.dtype)),
        grid=grid,
        in_specs=[pl.BlockSpec((1, Ct, pad_len), lambda c: (0, c, 0)),
                  pl.BlockSpec((1, Ct, T), lambda c: (0, c, 0))],
        out_specs=(pl.BlockSpec((1, Ct, T_out), lambda c: (0, c, 0)),
                   pl.BlockSpec((1, Ct, pad_len), lambda c: (0, c, 0))),
        compiler_params=pltpu.CompilerParams(
            dimension_semantics=("parallel",)),
    )(buffer, x)
    return out, new_buf


class TemporalPad1d:
    """JAX/Pallas port of pytorch_tcn_sa.pad.TemporalPad1d (forward semantics)."""

    def __init__(self, padding, in_channels, buffer=None,
                 padding_mode="zeros", causal=False, dtype=jnp.float32):
        if not isinstance(padding, int):
            raise ValueError("padding must be an integer")
        if padding_mode not in PADDING_MODES:
            raise ValueError(f"padding_mode must be one of {PADDING_MODES}")
        self.pad_len = padding
        self.causal = causal
        self.padding_mode = padding_mode
        self.in_channels = in_channels
        if causal:
            self.left_padding = self.pad_len
            self.right_padding = 0
        else:
            self.left_padding = self.pad_len // 2
            self.right_padding = self.pad_len - self.left_padding
        # Deterministic buffer init (matches torch.zeros / torch.full).
        if buffer is None:
            self.buffer = jnp.zeros((1, in_channels, self.pad_len), dtype)
        elif isinstance(buffer, (int, float)):
            self.buffer = jnp.full((1, in_channels, self.pad_len), buffer, dtype)
        else:
            self.buffer = jnp.asarray(buffer, dtype)

    def __call__(self, x, inference=False):
        if inference:
            return self.pad_inference(x)
        return temporal_pad_1d(x, self.left_padding, self.right_padding,
                               self.padding_mode)

    def pad_inference(self, x):
        if not self.causal:
            raise ValueError("Streaming inference only supported for causal pads.")
        if x.shape[0] != 1:
            raise ValueError("Streaming inference requires batch size 1.")
        # TODO(synk): host-side buffer mutation is eager-only; wrap in a scan
        # carry for jitted streaming.
        out, new_buf = streaming_pad_1d(self.buffer, x, self.pad_len)
        self.buffer = new_buf
        return out

    def reset_buffer(self):
        self.buffer = jnp.zeros_like(self.buffer)


# --------------------------------------------------------------------------- #
# Reference + test
# --------------------------------------------------------------------------- #
def _ref_pad(x, left, right, mode):
    np_mode = {"zeros": "constant", "reflect": "reflect",
               "replicate": "edge", "circular": "wrap"}[mode]
    if np_mode == "constant":
        return jnp.pad(x, ((0, 0), (0, 0), (left, right)), mode="constant",
                       constant_values=0.0)
    return jnp.pad(x, ((0, 0), (0, 0), (left, right)), mode=np_mode)


if __name__ == "__main__":
    key = jax.random.PRNGKey(0)
    N, C, T = 2, 4, 16
    pad_len = 3
    x = jax.random.normal(key, (N, C, T), dtype=jnp.float32)

    ok = True

    # Non-causal and causal, all padding modes.
    for causal in (False, True):
        for mode in PADDING_MODES:
            m = TemporalPad1d(pad_len, C, padding_mode=mode, causal=causal)
            y = m(x)
            y = jax.block_until_ready(y)
            y_ref = _ref_pad(x, m.left_padding, m.right_padding, mode)
            if y.shape != (N, C, T + pad_len):
                ok = False
            if not np.allclose(np.asarray(y), np.asarray(y_ref), atol=1e-6):
                ok = False

    # Streaming inference path (causal, batch=1).
    m = TemporalPad1d(pad_len, C, padding_mode="zeros", causal=True)
    x1 = x[:1]
    y_inf = jax.block_until_ready(m(x1, inference=True))
    y_inf_ref = jnp.concatenate(
        [jnp.zeros((1, C, pad_len), jnp.float32), x1], axis=-1)
    if not np.allclose(np.asarray(y_inf), np.asarray(y_inf_ref), atol=1e-6):
        ok = False
    if not np.allclose(np.asarray(m.buffer), np.asarray(x1[:, :, -pad_len:]),
                       atol=1e-6):
        ok = False

    if ok:
        print("KERNEL_OK")
    else:
        print("KERNEL_MISMATCH")
</pallas_src>

<mosaic_0001>
module attributes {stable_mosaic.version = 11 : i64} {
  func.func @_pad_kernel(%arg0: i32, %arg1: i32, %arg2: memref<1x4x16xf32, #tpu.memory_space<vmem>>, %arg3: memref<1x4x19xf32, #tpu.memory_space<vmem>>) attributes {dimension_semantics = [#tpu.dimension_semantics<parallel>, #tpu.dimension_semantics<parallel>], iteration_bounds = array<i64: 2, 1>, scalar_prefetch = 0 : i64, scratch_operands = 0 : i64, tpu.core_type = #tpu.core_type<tc>, window_params = [{transform_indices = @transform_0, window_bounds = array<i64: 1, 4, 16>}, {transform_indices = @transform_1, window_bounds = array<i64: 1, 4, 19>}]} {
    %c0 = arith.constant 0 : index
    %c0_0 = arith.constant 0 : index
    %c0_1 = arith.constant 0 : index
    %0 = vector.load %arg2[%c0, %c0_0, %c0_1] : memref<1x4x16xf32, #tpu.memory_space<vmem>>, vector<1x4x16xf32>
    %c0_2 = arith.constant 0 : index
    %c0_3 = arith.constant 0 : index
    %c1 = arith.constant 1 : index
    %1 = vector.load %arg3[%c0_2, %c0_3, %c1] : memref<1x4x19xf32, #tpu.memory_space<vmem>>, vector<1x4x16xf32>
    tpu.vector_store %arg3[%c0_2, %c0_3, %c1], %0 {strides = array<i32>} : memref<1x4x19xf32, #tpu.memory_space<vmem>>, vector<1x4x16xf32>,
    %cst = arith.constant 0.000000e+00 : f32
    %2 = vector.broadcast %cst : f32 to vector<1x4x1xf32>
    %c0_4 = arith.constant 0 : index
    %c0_5 = arith.constant 0 : index
    %c0_6 = arith.constant 0 : index
    %3 = vector.load %arg3[%c0_4, %c0_5, %c0_6] : memref<1x4x19xf32, #tpu.memory_space<vmem>>, vector<1x4x1xf32>
    tpu.vector_store %arg3[%c0_4, %c0_5, %c0_6], %2 {strides = array<i32>} : memref<1x4x19xf32, #tpu.memory_space<vmem>>, vector<1x4x1xf32>,
    %cst_7 = arith.constant 0.000000e+00 : f32
    %4 = vector.broadcast %cst_7 : f32 to vector<1x4x2xf32>
    %c0_8 = arith.constant 0 : index
    %c0_9 = arith.constant 0 : index
    %c17 = arith.constant 17 : index
    %5 = vector.load %arg3[%c0_8, %c0_9, %c17] : memref<1x4x19xf32, #tpu.memory_space<vmem>>, vector<1x4x2xf32>
    tpu.vector_store %arg3[%c0_8, %c0_9, %c17], %4 {strides = array<i32>} : memref<1x4x19xf32, #tpu.memory_space<vmem>>, vector<1x4x2xf32>,
    return
  }
  func.func @transform_0(%arg0: i32, %arg1: i32) -> (i32, i32, i32) {
    %c0_i32 = arith.constant 0 : i32
    %c0_i32_0 = arith.constant 0 : i32
    return %arg0, %arg1, %c0_i32 : i32, i32, i32
  }
  func.func @transform_1(%arg0: i32, %arg1: i32) -> (i32, i32, i32) {
    %c0_i32 = arith.constant 0 : i32
    %c0_i32_0 = arith.constant 0 : i32
    return %arg0, %arg1, %c0_i32 : i32, i32, i32
  }
}

</mosaic_0001>

<bundles_post_ra>
// kernel: tpu_custom_call.1
= control target key start
LH: loop header
LB: loop body
LE: loop exit
PB: predicated region body
PF: predicated region fallthrough
CT: control target
= control target key end

     0   :  { %6 = vsyncpa [#allocation3], 0  ;;  %s632_s0 = inlined_call_operand.hbm [shape: f32[2,4,16], index: 0, kind: input, shape index: {}]   ;;  %s633_s1 = inlined_call_operand.hbm [shape: f32[2,4,19], index: 1, kind: output, shape index: {}]  }
   0x1   :  { %8 = vsyncpa [#allocation3 + $0x1], 0 }
   0x2   :  { %9 = vsyncpa [#allocation4], 0 }
   0x3   :  { %11 = vsyncpa [#allocation4 + $0x1], 0  ;;  %s460_s6 = smov 0   ;;  %s462_s7 = smov 0  }
   0x4   :  { %s464_s8 = smov 0   ;;  %s466_s9 = smov 0  }
   0x5   :  { %s468_s10 = smov 0   ;;  %s470_s11 = smov 0  }
   0x6 LB: > { %s255_s12 = sadd.s32 4294967295, %s444_s11   ;;  %s256_s13 = sadd.s32 4294967294, %s444_s11   ;;  %s444_s11 = sphi %s470_s11, %s17_s11   ;;  %s440_s10 = sphi %s468_s10, %s649_s10   ;;  %s436_s9 = sphi %s466_s9, %s648_s9   ;;  %s432_s8 = sphi %s464_s8, %s647_s8   ;;  %s428_s7 = sphi %s462_s7, %s646_s7   ;;  %s424_s6 = sphi %s460_s6, %s645_s6  }
   0x7   : > { %s29_s14 = sadd.s32 1, %s440_s10  ;;  %s38_s15 = sadd.s32 1, %s432_s8 }
   0x8   : > { %p31_p0 = scmp.ge.s32.totalorder %s29_s14, 2  ;;  %p45_p1 = scmp.ne.s32.totalorder %s432_s8, %s428_s7 }
   0x9   : > { %p46_p2 = scmp.eq.s32.totalorder %s444_s11, 0  ;;  %p51_p3 = scmp.ne.s32.totalorder %s428_s7, %s424_s6 }
   0xa   : > { %s651_s14 = smov (%p31_p0, %s29_s14), 0  ;;  %p52_p5 = scmp.eq.s32.totalorder %s255_s12, 0 }
   0xb   : > { %p501_p4 = por %p46_p2, %p45_p1  ;;  %s33_s17 = ssub.s32 %s440_s10, %s651_s14 }
   0xc   : > { %p77_p6 = scmp.eq.s32.totalorder %s255_s12, 1  ;;  %p36_p7 = scmp.eq.s32.totalorder %s33_s17, 0 }
   0xd   : > { %p507_p8 = por %p52_p5, %p51_p3  ;;  %p83_p10 = scmp.eq.s32.totalorder %s256_s13, 1 }
   0xe   : > { %p511_p9 = por %p77_p6, %p45_p1  ;;  %p280_p13 = scmp.lt.s32.totalorder %s444_s11, 2 }
   0xf   : > { %s516_s20 = scalar_select %p36_p7, %s432_s8, %s38_s15  }
  0x10   : > { %s637_s19 = scalar_select %p511_p9, 1, 0 }
  0x11   : > { %p518_p11 = por %p83_p10, %p51_p3  ;;  %s103_s22 = sand.u32 1, %s432_s8  }
  0x12   : > { %s259_s23 = sshll.u32 %s103_s22, 2  ;;  %s260_s24 = sshll.u32 %s440_s10, 6 }
  0x13   : > { %s638_s21 = scalar_select %p518_p11, 1, 0 }
  0x14   : > { %s529_s27 = scalar_lea.hbm %s632_s0, %s260_s24  ;;  %s107_s28 = scalar_lea.vmem [#allocation2], %s259_s23 }
  0x15   : > { %s115_s29 = sshll.u32 %s107_s28, 4  ;;  %p535_p0 = pnand %p280_p13, %p501_p4  ;;  %s531_s29 = int_to_ptr.vmem [resolvable:$true] %s115_s29 }
  0x16   : > { %s104_s2 = scalar_lea.sflag [#allocation3], %s103_s22  ;;  %s332_s3 = scalar_lea.hbm %s529_s27, 64 }
  0x17   : > { %p333_p3 = scmp.ne.s32.totalorder %s529_s27, %s332_s3  ;;  %p334_p5 = pneg %p535_p0 }
  0x18   : > { %s337_s12 = scalar_lea.hbm %s632_s0, 128  ;;  %p338_p4 = scmp.lt.u32.totalorder %s529_s27, %s632_s0 }
  0x19   : > { %p335_p6 = pnand %p334_p5, %p333_p3  ;;  %p339_p10 = scmp.lt.u32.totalorder %s337_s12, %s332_s3 }
  0x1a   : > { %p341_p12 = scmp.lt.u32.totalorder %s332_s3, %s529_s27 }
  0x1b   : > { %p336_p7 = pneg %p335_p6  ;;  %p340_p13 = por %p339_p10, %p338_p4 }
  0x1d   : > { %p342_p1 = por %p341_p12, %p340_p13 }
  0x1f   : > { %p343_p2 = pnand %p342_p1, %p336_p7 }
  0x21   : > { %346 = shalt.err (!%p343_p2)
}
  0x22   : > { %s347_s16 = scalar_lea.vmem %s531_s29, 64  ;;  %s446_s17 = smov [#allocation2]  }
  0x23   : > { %p348_p3 = scmp.ne.s32.totalorder %s531_s29, %s347_s16  ;;  %s352_s22 = sshll.u32 %s446_s17, 4  ;;  %s353_s22 = int_to_ptr.vmem [resolvable:$false] %s352_s22 }
  0x24   : > { %s354_s23 = scalar_lea.vmem %s353_s22, 128  ;;  %p355_p9 = scmp.lt.s32.totalorder %s531_s29, %s353_s22 }
  0x25   : > { %p350_p6 = pnand %p348_p3, %p334_p5  ;;  %p356_p4 = scmp.lt.s32.totalorder %s354_s23, %s347_s16 }
  0x27   : > { %p351_p11 = pneg %p350_p6  ;;  %p357_p10 = por %p356_p4, %p355_p9 }
  0x29   : > { %p358_p12 = pnand %p357_p10, %p351_p11 }
  0x2b   : > { %361 = shalt.err (!%p358_p12)
}
  0x2c   : > { %275 = dma.hbm_to_vmem [thread:$0]  (!%p535_p0), %s529_s27, 64, %s531_s29, %s104_s2  }
  0x2d   : > { %p640_p1 = scmp.lt.s32.totalorder %s444_s11, 3  ;;  %p641_p2 = scmp.ge.s32.totalorder %s444_s11, 1 }
  0x2f   : > { %p121_p5 = pnand %p641_p2, %p640_p1 }
  0x30   : > { %s571_s24 = sand.u32 (!%p121_p5), 1, %s428_s7  }
  0x31   : > { %124 = sbr.rel (%p121_p5) target bundleno = 189 (0xbd), region = 24  ;;  %s262_s25 = sshll.u32 (!%p121_p5), %s571_s24, 2 }
  0x32   : > { %s127_s26 = scalar_lea.sflag (!%p121_p5), [#allocation3], %s571_s24  ;;  %s130_s28 = scalar_lea.vmem (!%p121_p5), [#allocation2], %s262_s25 }
  0x38   : > { %415 = dma.done.wait (%p507_p8), %s127_s26, 64  }
  0x39   : > { %417 = vsyncadd (%p507_p8), %s127_s26, 4294967232  ;;  %v149_v0 = vld [vmem:[%s130_s28] sm:$0xf]  ;;  %s447_s27 = smov 1   ;;  %vm154_vm0 = vcmask 134152   ;;  %s265_s29 = sshll.u32 %s436_s9, 6 }
  0x3a   : > { %151 = vrot.lane.b32.xlu0 %v149_v0, %s447_s27  ;;  %s148_s30 = scalar_lea.vmem [#allocation5], %s262_s25  ;;  %vm156_vm1 = vcmask 3072   ;;  %vm158_vm2 = vcmask 150664   ;;  %s583_s5 = scalar_lea.hbm %s633_s1, %s265_s29  ;;  %v448_v2 = vmov 0.0  }
  0x3b   : > { %s175_s2 = sshll.u32 %s148_s30, 4  ;;  %s161_s9 = scalar_lea.sflag [#allocation4], %s571_s24  ;;  %s585_s2 = int_to_ptr.vmem [resolvable:$true] %s175_s2 }
  0x3c   : > { %s362_s18 = scalar_lea.vmem %s585_s2, 64  ;;  %p642_p9 = scmp.ne.s32.totalorder %s637_s19, 0 }
  0x3d   : > { %p363_p8 = scmp.ne.s32.totalorder %s585_s2, %s362_s18  ;;  %s449_s12 = smov [#allocation5]  }
  0x3e   : > { %s366_s13 = sshll.u32 %s449_s12, 4  ;;  %s367_s13 = int_to_ptr.vmem [resolvable:$false] %s366_s13 }
  0x3f   : > { %p364_p11 = pnand %p363_p8, %p642_p9  ;;  %s368_s15 = scalar_lea.vmem %s367_s13, 128 }
  0x40   : > { %p369_p7 = scmp.lt.s32.totalorder %s585_s2, %s367_s13  ;;  %p370_p13 = scmp.lt.s32.totalorder %s368_s15, %s362_s18 }
  0x41   : > { %p365_p0 = pneg %p364_p11 }
  0x42   : > { %p371_p3 = por %p370_p13, %p369_p7 }
  0x44   : > { %p372_p6 = pnand %p371_p3, %p365_p0 }
  0xac   : > { %v152_v1 = vpop.permute.xlu0 %151 }
  0xad   : > { %155 = vst.msk [vmem:[%s148_s30] sm:$0xf] %vm154_vm0, %v152_v1 }
  0xae   : > { %157 = vst.msk [vmem:[%s148_s30] sm:$0xf] %vm156_vm1, %v448_v2 }
  0xaf   : > { %159 = vst.msk [vmem:[%s148_s30] sm:$0xf] %vm158_vm2, %v448_v2 }
  0xb0   : > { %375 = shalt.err (!%p372_p6)
}
  0xb1   : > { %s376_s16 = scalar_lea.hbm %s583_s5, 64  ;;  %s380_s23 = scalar_lea.hbm %s633_s1, 128 }
  0xb2   : > { %p377_p4 = scmp.ne.s32.totalorder %s583_s5, %s376_s16  ;;  %p381_p1 = scmp.lt.u32.totalorder %s583_s5, %s633_s1 }
  0xb3   : > { %p382_p2 = scmp.lt.u32.totalorder %s380_s23, %s376_s16  ;;  %p384_p8 = scmp.lt.u32.totalorder %s376_s16, %s583_s5 }
  0xb4   : > { %p378_p10 = pnand %p377_p4, %p642_p9 }
  0xb5   : > { %p383_p5 = por %p382_p2, %p381_p1 }
  0xb6   : > { %p379_p12 = pneg %p378_p10 }
  0xb7   : > { %p385_p11 = por %p384_p8, %p383_p5 }
  0xb9   : > { %p386_p0 = pnand %p385_p11, %p379_p12 }
  0xbb   : > { %389 = shalt.err (!%p386_p0)
}
  0xbc   : > { %270 = dma.vmem_to_hbm [thread:$0]  (%p642_p9), %s585_s2, 64, %s583_s5, %s161_s9  }
  0xbd PF: > { %s187_s26 = sand.u32 1, %s424_s6   ;;  %p643_p7 = scmp.ne.s32.totalorder %s638_s21, 0 }
  0xbe   : > { %p644_p13 = scmp.ge.s32.totalorder %s444_s11, 2  ;;  %s188_s28 = scalar_lea.sflag [#allocation4], %s187_s26 }
  0xc0   : > { %p277_p3 = pnand %p644_p13, %p643_p7 }
  0xc2   : > { %419 = dma.done.wait (!%p277_p3), %s188_s28, 64  }
  0xc3   : > { %421 = vsyncadd (!%p277_p3), %s188_s28, 4294967232  ;;  %s17_s11 = sadd.s32 1, %s444_s11   ;;  %s645_s6 = smov %s428_s7 }
  0xc4   : > { %p14_p6 = scmp.ge.s32.totalorder %s17_s11, 4   ;;  %s646_s7 = smov %s432_s8 }
  0xc5   : > { %s647_s8 = smov %s516_s20  ;;  %s648_s9 = smov %s440_s10 }
  0xc6   : > { %s649_s10 = smov %s651_s14  ;;  %16 = sbr.rel (!%p14_p6) target bundleno = 6 (0x6), region = 69 }
  0xcd   :  { %193 = vsyncpa [#allocation3], 1 }
  0xce   :  { %195 = vsyncpa [#allocation3 + $0x1], 1 }
  0xcf   :  { %196 = vsyncpa [#allocation4], 1 }
  0xd0   :  { %198 = vsyncpa [#allocation4 + $0x1], 1 }

</bundles_post_ra>
